<compile_context>
chip_gen: v6e
topology: v6e:2x2x1
jax: 0.10.0
libtpu: 0.0.40
codegen_flags: <defaults>
</compile_context>

<pallas_src>
import functools

import jax
import jax.numpy as jnp
from jax import lax
from jax.experimental import pallas as pl
from jax.experimental.pallas import tpu as pltpu


def _round_up(n, m):
    return ((n + m - 1) // m) * m


def _post_kernel(x_ref, noise_ref, out_ref, *, value):
    """softmax -> scatter(-noise_max at argmax) -> softmax, over the class (lane) axis."""
    x = x_ref[...].astype(jnp.float32)
    B, C = x.shape
    col = lax.broadcasted_iota(jnp.int32, (B, C), 1)

    # ---- softmax over classes (lane axis) ---------------------------------
    m = jnp.max(x, axis=-1, keepdims=True)
    e = jnp.exp(x - m)
    p = e / jnp.sum(e, axis=-1, keepdims=True)          # exact denominator

    # ---- top-1 index straight from the logits (softmax is monotone);
    #      first occurrence on ties, like torch.max ---------------------------
    cand = jnp.where(x == m, col, C)                    # C acts as a +inf sentinel
    top1 = jnp.min(cand, axis=-1, keepdims=True)
    is_top1 = col == top1

    # ---- noise = randn * value; scatter the ORIGINAL scaled-noise max (negated)
    #      into the top-1 column ---------------------------------------------
    noise = noise_ref[...].astype(jnp.float32) * value
    noise_max = jnp.max(noise, axis=-1, keepdims=True)
    noise = jnp.where(is_top1, -noise_max, noise)

    # ---- second softmax on (p + noise): p in [0,1] and |noise| ~ a few*value,
    #      so no max-shift is needed (shift invariance) ----------------------
    e2 = jnp.exp(p + noise)
    out = e2 / jnp.sum(e2, axis=-1, keepdims=True)

    out_ref[...] = out.astype(out_ref.dtype)


def _choose_block_rows(N, C, *, tile_bytes=1 << 20):
    """Bytes-based row-tile sizing: ~1 MiB f32 x-tile keeps x/noise/out double-buffers
    plus live temps under the most conservative scoped-VMEM default (16 MiB on v5e),
    while ~1 MiB tiles already sit near the measured HBM-roofline plateau."""
    rows8 = _round_up(max(N, 1), 8)
    rows = max(8, (tile_bytes // (4 * max(C, 1))) // 8 * 8)
    block = min(rows, rows8)
    # >=4 grid steps (>=2 per TensorCore on v7x megacore) when the batch allows,
    # keeping blocks >= 256 rows so per-step overhead (~0.35us) stays negligible.
    if rows8 >= 4 * 256:
        block = min(block, max(256, _round_up((rows8 + 3) // 4, 8)))
    return block


def post_forward(x, noise, value):
    """x: (N, C) logits; noise: (N, C) standard-normal draws (randn_like equivalent).
    Returns softmax(softmax(x) + scattered noise), shape (N, C), dtype of x."""
    N, C = x.shape
    assert noise.shape == (N, C)

    block_b = _choose_block_rows(N, C)
    grid = pl.cdiv(N, block_b)          # ragged final block handled by Pallas masking

    kernel = functools.partial(_post_kernel, value=float(value))

    return pl.pallas_call(
        kernel,
        out_shape=jax.ShapeDtypeStruct((N, C), x.dtype),
        grid_spec=pltpu.PrefetchScalarGridSpec(
            num_scalar_prefetch=0,
            grid=(grid,),
            in_specs=[
                pl.BlockSpec((block_b, C), lambda i: (i, 0)),
                pl.BlockSpec((block_b, C), lambda i: (i, 0)),
            ],
            out_specs=pl.BlockSpec((block_b, C), lambda i: (i, 0)),
        ),
        compiler_params=pltpu.CompilerParams(dimension_semantics=("parallel",)),
    )(x, noise)


if __name__ == "__main__":
    # The original module draws value ~ U(0.05, 0.1); fix it deterministically.
    value = 0.075

    key = jax.random.PRNGKey(0)
    kx, kn = jax.random.split(key)
    # Small (batch, num_classes) logits as fed to `post`.
    N, C = 8, 100
    x = jax.random.normal(kx, (N, C), dtype=jnp.float32)
    noise = jax.random.normal(kn, (N, C), dtype=jnp.float32)   # torch.randn_like equivalent

    # TODO(synk): the AlexNet conv/pool/linear backbone is standard dense XLA territory
    # and is not re-implemented as a Pallas kernel; this kernel covers the custom `post` head.
    out = jax.block_until_ready(post_forward(x, noise, value))

    # Pure-JAX reference using the same noise draw.
    p = jax.nn.softmax(x, axis=1)
    top1 = jnp.argmax(p, axis=1)
    n = noise * value
    n = n.at[jnp.arange(N), top1].set(-jnp.max(n, axis=1))
    ref = jax.nn.softmax(p + n, axis=1)

    assert out.shape == (N, C)
    assert bool(jnp.all(jnp.isfinite(out)))
    assert bool(jnp.all(out >= 0.0))
    assert bool(jnp.all(jnp.abs(jnp.sum(out, axis=-1) - 1.0) < 1e-4))
    assert bool(jnp.allclose(out, ref, atol=1e-5, rtol=1e-5))

    print("KERNEL_OK")
</pallas_src>

<mosaic_0001>
module attributes {stable_mosaic.version = 11 : i64} {
  func.func @_post_kernel(%arg0: i32, %arg1: memref<8x100xf32, #tpu.memory_space<vmem>>, %arg2: memref<8x100xf32, #tpu.memory_space<vmem>>, %arg3: memref<8x100xf32, #tpu.memory_space<vmem>>) attributes {dimension_semantics = [#tpu.dimension_semantics<parallel>], iteration_bounds = array<i64: 1>, scalar_prefetch = 0 : i64, scratch_operands = 0 : i64, tpu.core_type = #tpu.core_type<tc>, window_params = [{transform_indices = @transform_0, window_bounds = array<i64: 8, 100>}, {transform_indices = @transform_1, window_bounds = array<i64: 8, 100>}, {transform_indices = @transform_2, window_bounds = array<i64: 8, 100>}]} {
    %c0 = arith.constant 0 : index
    %c0_0 = arith.constant 0 : index
    %0 = vector.load %arg1[%c0, %c0_0] : memref<8x100xf32, #tpu.memory_space<vmem>>, vector<8x100xf32>
    %1 = tpu.iota {dimensions = array<i32: 1>} : vector<8x100xi32>
    %cst = arith.constant dense<0xFF800000> : vector<8xf32>
    %2 = vector.multi_reduction <maximumf>, %0, %cst [1] : vector<8x100xf32> to vector<8xf32>
    %3 = vector.shape_cast %2 : vector<8xf32> to vector<8x1xf32>
    %4 = vector.broadcast %3 : vector<8x1xf32> to vector<8x100xf32>
    %5 = arith.subf %0, %4 : vector<8x100xf32>
    %6 = math.exp %5 : vector<8x100xf32>
    %cst_1 = arith.constant dense<0.000000e+00> : vector<8xf32>
    %7 = vector.multi_reduction <add>, %6, %cst_1 [1] : vector<8x100xf32> to vector<8xf32>
    %8 = vector.shape_cast %7 : vector<8xf32> to vector<8x1xf32>
    %9 = vector.broadcast %8 : vector<8x1xf32> to vector<8x100xf32>
    %10 = arith.divf %6, %9 : vector<8x100xf32>
    %11 = vector.broadcast %3 : vector<8x1xf32> to vector<8x100xf32>
    %12 = arith.cmpf oeq, %0, %11 : vector<8x100xf32>
    %c100_i32 = arith.constant 100 : i32
    %13 = vector.broadcast %c100_i32 : i32 to vector<8x100xi32>
    %14 = arith.select %12, %1, %13 : vector<8x100xi1>, vector<8x100xi32>
    %cst_2 = arith.constant dense<2147483647> : vector<8xi32>
    %15 = vector.multi_reduction <minsi>, %14, %cst_2 [1] : vector<8x100xi32> to vector<8xi32>
    %16 = vector.shape_cast %15 : vector<8xi32> to vector<8x1xi32>
    %17 = vector.broadcast %16 : vector<8x1xi32> to vector<8x100xi32>
    %18 = arith.cmpi eq, %1, %17 : vector<8x100xi32>
    %c0_3 = arith.constant 0 : index
    %c0_4 = arith.constant 0 : index
    %19 = vector.load %arg2[%c0_3, %c0_4] : memref<8x100xf32, #tpu.memory_space<vmem>>, vector<8x100xf32>
    %cst_5 = arith.constant 7.500000e-02 : f32
    %20 = vector.broadcast %cst_5 : f32 to vector<8x100xf32>
    %21 = arith.mulf %19, %20 : vector<8x100xf32>
    %cst_6 = arith.constant dense<0xFF800000> : vector<8xf32>
    %22 = vector.multi_reduction <maximumf>, %21, %cst_6 [1] : vector<8x100xf32> to vector<8xf32>
    %23 = vector.shape_cast %22 : vector<8xf32> to vector<8x1xf32>
    %cst_7 = arith.constant 0.000000e+00 : f32
    %24 = vector.broadcast %cst_7 : f32 to vector<8x1xf32>
    %25 = arith.subf %24, %23 : vector<8x1xf32>
    %26 = vector.shape_cast %25 : vector<8x1xf32> to vector<8x1xf32>
    %27 = vector.broadcast %26 : vector<8x1xf32> to vector<8x100xf32>
    %28 = arith.select %18, %27, %21 : vector<8x100xi1>, vector<8x100xf32>
    %29 = arith.addf %10, %28 : vector<8x100xf32>
    %30 = math.exp %29 : vector<8x100xf32>
    %cst_8 = arith.constant dense<0.000000e+00> : vector<8xf32>
    %31 = vector.multi_reduction <add>, %30, %cst_8 [1] : vector<8x100xf32> to vector<8xf32>
    %32 = vector.shape_cast %31 : vector<8xf32> to vector<8x1xf32>
    %33 = vector.broadcast %32 : vector<8x1xf32> to vector<8x100xf32>
    %34 = arith.divf %30, %33 : vector<8x100xf32>
    %c0_9 = arith.constant 0 : index
    %c0_10 = arith.constant 0 : index
    %35 = vector.load %arg3[%c0_9, %c0_10] : memref<8x100xf32, #tpu.memory_space<vmem>>, vector<8x100xf32>
    tpu.vector_store %arg3[%c0_9, %c0_10], %34 {strides = array<i32>} : memref<8x100xf32, #tpu.memory_space<vmem>>, vector<8x100xf32>,
    return
  }
  func.func @transform_0(%arg0: i32) -> (i32, i32) {
    %c0_i32 = arith.constant 0 : i32
    %c0_i32_0 = arith.constant 0 : i32
    return %arg0, %c0_i32 : i32, i32
  }
  func.func @transform_1(%arg0: i32) -> (i32, i32) {
    %c0_i32 = arith.constant 0 : i32
    %c0_i32_0 = arith.constant 0 : i32
    return %arg0, %c0_i32 : i32, i32
  }
  func.func @transform_2(%arg0: i32) -> (i32, i32) {
    %c0_i32 = arith.constant 0 : i32
    %c0_i32_0 = arith.constant 0 : i32
    return %arg0, %c0_i32 : i32, i32
  }
}

</mosaic_0001>

<bundles_post_ra>
// kernel: tpu_custom_call.1
= control target key start
LH: loop header
LB: loop body
LE: loop exit
PB: predicated region body
PF: predicated region fallthrough
CT: control target
= control target key end

     0   :  { %7 = vsyncpa [#allocation3], 0  ;;  %s211_s0 = inlined_call_operand.hbm [shape: f32[8,100], index: 0, kind: input, shape index: {}]   ;;  %s212_s1 = inlined_call_operand.hbm [shape: f32[8,100], index: 1, kind: input, shape index: {}]   ;;  %s213_s2 = inlined_call_operand.hbm [shape: f32[8,100], index: 2, kind: output, shape index: {}]  }
   0x1   :  { %8 = vsyncpa [#allocation6], 0 }
   0x2   :  { %9 = vsyncpa [#allocation4], 0  ;;  %s178_s9 = smov [#allocation2]   ;;  %s179_s11 = smov [#allocation5]  }
   0x3   :  { %s16_s10 = sshll.u32 %s178_s9, 4  ;;  %s26_s12 = sshll.u32 %s179_s11, 4  ;;  %s17_s10 = int_to_ptr.vmem [resolvable:$true] %s16_s10  ;;  %s27_s12 = int_to_ptr.vmem [resolvable:$true] %s26_s12 }
   0x4   :  { %s120_s13 = scalar_lea.vmem %s17_s10, 128  ;;  %p125_p1 = scmp.lt.s32.totalorder %s17_s10, %s17_s10 }
   0x5   :  { %p121_p0 = scmp.ne.s32.totalorder %s17_s10, %s120_s13  ;;  %p126_p2 = scmp.lt.s32.totalorder %s120_s13, %s120_s13 }
   0x7   :  { %p127_p3 = por %p126_p2, %p125_p1 }
   0x9   :  { %p128_p4 = pnand %p127_p3, %p121_p0 }
   0xb   :  { %131 = shalt.err (!%p128_p4)
}
   0xc   :  { %19 = dma.hbm_to_vmem [thread:$0]  %s211_s0, 128, %s17_s10, [#allocation3]  }
   0xd   :  { %s140_s16 = scalar_lea.vmem %s27_s12, 128  ;;  %p145_p6 = scmp.lt.s32.totalorder %s27_s12, %s27_s12 }
   0xe   :  { %p141_p5 = scmp.ne.s32.totalorder %s27_s12, %s140_s16  ;;  %p146_p7 = scmp.lt.s32.totalorder %s140_s16, %s140_s16 }
  0x10   :  { %p147_p8 = por %p146_p7, %p145_p6 }
  0x12   :  { %p148_p9 = pnand %p147_p8, %p141_p5 }
  0x14   :  { %151 = shalt.err (!%p148_p9)
}
  0x15   :  { %29 = dma.hbm_to_vmem [thread:$0]  %s212_s1, 128, %s27_s12, [#allocation6]  }
  0x16   :  { %172 = dma.done.wait [#allocation3], 128  }
  0x17   :  { %173 = vsyncadd [#allocation3], 4294967168 }
  0x18   :  { %174 = dma.done.wait [#allocation6], 128  }
  0x19   :  { %175 = vsyncadd [#allocation6], 4294967168  ;;  %vm39_vm0 = vcmask 818176   ;;  %v36_v0 = vld [vmem:[#allocation2] sm:$0xff]  ;;  %v37_v2 = vlaneseq  ;;  %v69_v13 = vld [vmem:[#allocation5] sm:$0xff]  ;;  %s180_s0 = smov [#allocation7]  }
  0x1a   :  { %v40_v1 = vsel %vm39_vm0, %v36_v0, -inf  ;;  %v70_v14 = vmul.f32 0.075, %v69_v13  ;;  %s91_s1 = sshll.u32 %s180_s0, 4  ;;  %s92_s1 = int_to_ptr.vmem [resolvable:$true] %s91_s1 }
  0x1b   :  { %41 = vmax.xlane.f32.xlu0 %v40_v1  ;;  %v38_v3 = vand.u32 127, %v37_v2  ;;  %s152_s19 = scalar_lea.vmem %s92_s1, 128  ;;  %p157_p11 = scmp.lt.s32.totalorder %s92_s1, %s92_s1 }
  0x1c   :  { %v71_v15 = vsel %vm39_vm0, %v70_v14, -inf  ;;  %p153_p10 = scmp.ne.s32.totalorder %s92_s1, %s152_s19  ;;  %p158_p12 = scmp.lt.s32.totalorder %s152_s19, %s152_s19 }
  0x1e   :  { %p159_p13 = por %p158_p12, %p157_p11 }
  0x20   :  { %p160_p0 = pnand %p159_p13, %p153_p10 }
  0xa4   :  { %v42_v4 = vpop.xlane.xlu0 %41 }
  0xa5   :  { %v43_v5 = vsub.f32 %v36_v0, %v42_v4  ;;  %vm51_vm1 = vcmp.eq.f32.partialorder %v36_v0, %v42_v4 }
  0xa6   :  { %v52_v6 = vsel %vm51_vm1, %v38_v3, 100 }
  0xa7   :  { %v44_v7 = vmul.f32 1.442695, %v43_v5  ;;  %v53_v8 = vsel %vm39_vm0, %v52_v6, 2147483647 }
  0xa8   :  { %v55_v9 = vshra.s32 %v53_v8, 16  ;;  %v54_v16 = vand.u32 65535, %v53_v8 }
  0xa9   :  { %104 = vpow2.f32 %v44_v7 }
  0xaa   :  { %v57_v10 = vcvt.s32.f32 %v55_v9  ;;  %v56_v18 = vcvt.s32.f32 %v54_v16 }
  0xac   :  { %58 = vmin.xlane.f32.xlu0 %v57_v10 }
  0xb0   :  { %72 = vmax.xlane.f32.xlu0 %v71_v15 }
  0xb6   :  { %v105_v11 = vpop.eup %104 }
  0xb7   :  { %v46_v12 = vsel %vm39_vm0, %v105_v11, 0.0 }
  0xb8   :  { %47 = vadd.xlane.f32.xlu1 %v46_v12 }
 0x135   :  { %v59_v17 = vpop.xlane.xlu0 %58 }
 0x136   :  { %vm60_vm2 = vcmp.eq.f32.partialorder %v57_v10, %v59_v17  ;;  %v65_v21 = vcvt.f32.s32 %v59_v17 }
 0x137   :  { %v61_v19 = vsel %vm60_vm2, %v56_v18, inf }
 0x138   :  { %62 = vmin.xlane.f32.xlu1 %v61_v19  ;;  %v66_v24 = vshll.u32 %v65_v21, 16 }
 0x139   :  { %v73_v22 = vpop.xlane.xlu0 %72 }
 0x13a   :  { %v74_v27 = vsub.f32 0.0, %v73_v22 }
 0x141   :  { %v48_v20 = vpop.xlane.xlu1 %47 }
 0x142   :  { %106 = vrcp.f32 %v48_v20 }
 0x14f   :  { %v107_v26 = vpop.eup %106 }
 0x150   :  { %v50_v29 = vmul.f32 %v107_v26, %v105_v11 }
 0x1c1   :  { %v63_v23 = vpop.xlane.xlu1 %62 }
 0x1c2   :  { %v64_v25 = vcvt.f32.s32 %v63_v23 }
 0x1c4   :  { %v67_v28 = vadd.s32 %v66_v24, %v64_v25 }
 0x1c6   :  { %vm68_vm3 = vcmp.eq.s32.totalorder %v38_v3, %v67_v28 }
 0x1c7   :  { %v75_v30 = vsel %vm68_vm3, %v74_v27, %v70_v14 }
 0x1c8   :  { %v76_v31 = vadd.f32 %v75_v30, %v50_v29 }
 0x1ca   :  { %v77_v32 = vmul.f32 1.442695, %v76_v31 }
 0x1cc   :  { %108 = vpow2.f32 %v77_v32 }
 0x1d9   :  { %v109_v33 = vpop.eup %108 }
 0x1da   :  { %v79_v34 = vsel %vm39_vm0, %v109_v33, 0.0 }
 0x1db   :  { %80 = vadd.xlane.f32.xlu1 %v79_v34 }
 0x264   :  { %v81_v35 = vpop.xlane.xlu1 %80 }
 0x265   :  { %110 = vrcp.f32 %v81_v35 }
 0x272   :  { %v111_v36 = vpop.eup %110 }
 0x273   :  { %v83_v37 = vmul.f32 %v111_v36, %v109_v33 }
 0x275   :  { %84 = vst.msk [vmem:[#allocation7] sm:$0xff] %vm39_vm0, %v83_v37 }
 0x276   :  { %163 = shalt.err (!%p160_p0)
}
 0x277   :  { %94 = dma.vmem_to_hbm [thread:$0]  %s92_s1, 128, %s213_s2, [#allocation4]  }
 0x278   :  { %176 = dma.done.wait [#allocation4], 128  }
 0x279   :  { %177 = vsyncadd [#allocation4], 4294967168 }
 0x27a   :  { %98 = vsyncpa [#allocation3], 1 }
 0x27b   :  { %99 = vsyncpa [#allocation6], 1 }
 0x27c   :  { %100 = vsyncpa [#allocation4], 1 }

</bundles_post_ra>
